<compile_context>
chip_gen: v6e
topology: v6e:2x2x1
jax: 0.10.0
libtpu: 0.0.40
codegen_flags: <defaults>
</compile_context>

<pallas_src>
import math
import numpy as np
import jax
import jax.numpy as jnp
from jax.experimental import pallas as pl
from jax.experimental.pallas import tpu as pltpu  # noqa: F401  (kept for CompilerParams use if needed)

# ---- small hyperparameters consistent with the module's asserts -------------
D   = 32          # embed_dim
HQ  = 4           # num_q_heads
HKV = 2           # num_kv_heads
DH  = D // HQ     # head_dim = 8 (multiple of 8, divisible by 4)
P   = DH // 2     # rope rotation pairs per head = 4
QTR = DH // 4     # 2D-rope freqs per spatial axis = 2
G   = 4           # grid_size
S   = G * G       # spatial tokens = 16
T   = 3           # history timesteps

QW = HQ * DH      # q lane width  = 32
KW = HKV * DH     # k/v lane width = 16
QP = HQ * P       # 16
KP = HKV * P      # 8


# =============================== Pallas kernel ================================

def _tga_kernel(tok_ref, trig_ref, wqkv_ref, wo_ref, out_ref):
    """Fused projection + RoPE + per-token head attention + out_proj for the S grid tokens."""
    tok = tok_ref[...]                                                        # (S, D)
    qkv = jnp.dot(tok, wqkv_ref[...], preferred_element_type=jnp.float32)     # (S, QW+2*KW)

    # q/k weight columns were permuted per head to [even-pair members | odd-pair members]
    # (q.k dot products are permutation invariant); v stays in original order.
    q = qkv[:, :QW]                  # (S, 32)
    k = qkv[:, QW:QW + KW]           # (S, 16)
    v = qkv[:, QW + KW:]             # (S, 16)  original head-interleaved layout

    trig = trig_ref[...]             # (S, 2*QP + 2*KP) = [cos_q | sin_q | cos_k | sin_k]
    cq = trig[:, 0:QP]
    sq = trig[:, QP:2 * QP]
    ck = trig[:, 2 * QP:2 * QP + KP]
    sk = trig[:, 2 * QP + KP:]

    qe, qo = q[:, :QP], q[:, QP:]
    ke, ko = k[:, :KP], k[:, KP:]

    # Full-slab 2D RoPE (angles pre-tiled across heads in the wrapper).
    qe_r = qe * cq - qo * sq
    qo_r = qe * sq + qo * cq
    ke_r = ke * ck - ko * sk
    ko_r = ke * sk + ko * ck

    # Per-(hq, hkv) dot products: one full-width elementwise product slab per KV head,
    # then a block-diagonal 0/1 matmul (MXU) as the segmented reduction.
    ke0 = jnp.concatenate([ke_r[:, :P]] * HQ, axis=1)        # (S, QP)
    ko0 = jnp.concatenate([ko_r[:, :P]] * HQ, axis=1)
    ke1 = jnp.concatenate([ke_r[:, P:]] * HQ, axis=1)
    ko1 = jnp.concatenate([ko_r[:, P:]] * HQ, axis=1)
    prod = jnp.concatenate(
        [qe_r * ke0 + qo_r * ko0, qe_r * ke1 + qo_r * ko1], axis=1)           # (S, 2*QP)

    r = jax.lax.broadcasted_iota(jnp.int32, (2 * QP, 2 * HQ), 0)
    c = jax.lax.broadcasted_iota(jnp.int32, (2 * QP, 2 * HQ), 1)
    bsel = ((r >= c * P) & (r < (c + 1) * P)).astype(jnp.float32)             # (32, 8)
    scores = jnp.dot(prod, bsel, preferred_element_type=jnp.float32)          # (S, 2*HQ)
    s0, s1 = scores[:, :HQ], scores[:, HQ:]                                   # per-KV-head

    # Softmax over the 2 KV heads == sigmoid of the scaled score difference (exact).
    scale = 1.0 / math.sqrt(DH)
    e = jnp.exp((s0 - s1) * scale)
    w1 = 1.0 / (1.0 + e)                                                      # (S, HQ)
    w0 = 1.0 - w1

    # Expand the per-head weights to lane width DH via a constant 0/1 matmul,
    # then take the weighted sum of the two value heads (original column order).
    ce = jax.lax.broadcasted_iota(jnp.int32, (2 * HQ, 2 * QW), 0)
    re = jax.lax.broadcasted_iota(jnp.int32, (2 * HQ, 2 * QW), 1)
    emat = ((re >= ce * DH) & (re < (ce + 1) * DH)).astype(jnp.float32)       # (8, 64)
    w_exp = jnp.dot(jnp.concatenate([w0, w1], axis=1), emat,
                    preferred_element_type=jnp.float32)                       # (S, 2*QW)

    v0t = jnp.concatenate([v[:, :DH]] * HQ, axis=1)                           # (S, QW)
    v1t = jnp.concatenate([v[:, DH:]] * HQ, axis=1)
    attn = v0t * w_exp[:, :QW] + v1t * w_exp[:, QW:]                          # (S, D)

    # Fused out_proj.
    out_ref[...] = jnp.dot(attn, wo_ref[...], preferred_element_type=jnp.float32)


# =============================== wrapper (glue) ===============================

def init_params(key):
    ks = jax.random.split(key, 5)
    scale = 1.0 / math.sqrt(D)
    init_embed = jax.random.normal(ks[0], (D,), jnp.float32)
    wq = jax.random.normal(ks[1], (D, HQ * DH), jnp.float32) * scale
    wk = jax.random.normal(ks[2], (D, HKV * DH), jnp.float32) * scale
    wv = jax.random.normal(ks[3], (D, HKV * DH), jnp.float32) * scale
    wo = jax.random.normal(ks[4], (D, D), jnp.float32) * scale
    inv_2d = 1.0 / (10000.0 ** (jnp.arange(QTR, dtype=jnp.float32) / QTR))
    inv_1d = 1.0 / (10000.0 ** (jnp.arange(P, dtype=jnp.float32) / P))
    coords = jnp.stack(
        jnp.meshgrid(jnp.arange(G), jnp.arange(G), indexing="ij"), axis=-1
    ).reshape(-1, 2).astype(jnp.float32)
    return dict(init_embed=init_embed, wq=wq, wk=wk, wv=wv, wo=wo,
                inv_x=inv_2d, inv_y=inv_2d, inv_t=inv_1d, coords=coords)


def tga_forward(static_grid, history_seq, p):
    # SDPA on (1, L, Hq, dh) treats (1, L) as batch dims -> attention is strictly
    # per-token over the head axis, and only the last S tokens reach out_proj, so the
    # init / history tokens never influence the returned grid.  Skip them entirely.
    del history_seq  # dead w.r.t. the module's returned value (see header comment)
    grid_tok = static_grid.reshape(S, D)

    # --- 2D-RoPE angle tables for the grid tokens, pre-tiled across heads (tiny glue) ---
    coords = p["coords"]                                                     # (S, 2)
    theta = jnp.concatenate([coords[:, 0:1] * p["inv_x"][None, :],
                             coords[:, 1:2] * p["inv_y"][None, :]], axis=-1)  # (S, P)
    cos_t, sin_t = jnp.cos(theta), jnp.sin(theta)
    trig = jnp.concatenate([jnp.tile(cos_t, (1, HQ)), jnp.tile(sin_t, (1, HQ)),
                            jnp.tile(cos_t, (1, HKV)), jnp.tile(sin_t, (1, HKV))],
                           axis=1)                                           # (S, 48)

    # --- permute q/k output columns per head to [even-pair members | odd-pair members]
    #     and fuse Wq / Wk / Wv into a single (D, 64) weight (one matmul, one DMA) ---
    perm_q = np.concatenate([
        np.array([h * DH + 2 * j for h in range(HQ) for j in range(P)]),
        np.array([h * DH + 2 * j + 1 for h in range(HQ) for j in range(P)])])
    perm_k = np.concatenate([
        np.array([h * DH + 2 * j for h in range(HKV) for j in range(P)]),
        np.array([h * DH + 2 * j + 1 for h in range(HKV) for j in range(P)])])
    w_qkv = jnp.concatenate(
        [p["wq"][:, perm_q], p["wk"][:, perm_k], p["wv"]], axis=1)           # (D, 64)

    out = pl.pallas_call(
        _tga_kernel,
        out_shape=jax.ShapeDtypeStruct((S, D), jnp.float32),
        grid=(1,),
        in_specs=[
            pl.BlockSpec((S, D), lambda i: (0, 0)),
            pl.BlockSpec((S, 2 * (QP + KP)), lambda i: (0, 0)),
            pl.BlockSpec((D, QW + 2 * KW), lambda i: (0, 0)),
            pl.BlockSpec((D, D), lambda i: (0, 0)),
        ],
        out_specs=pl.BlockSpec((S, D), lambda i: (0, 0)),
    )(grid_tok, trig, w_qkv, p["wo"])

    return out.reshape(G, G, D)


# ========================= pure-JAX reference (full module) ===================

def _rope_pairwise_ref(x, cos, sin):
    xr, xi = x[..., 0], x[..., 1]
    return jnp.stack([xr * cos - xi * sin, xr * sin + xi * cos], axis=-1)


def _apply_rope_1d_ref(x, pos, inv_freq):
    L, H, d = x.shape
    th = pos[:, None] * inv_freq[None, :]
    return _rope_pairwise_ref(x.reshape(L, H, -1, 2),
                              jnp.cos(th)[:, None, :], jnp.sin(th)[:, None, :]).reshape(L, H, d)


def _apply_rope_2d_ref(x, coords_xy, inv_x, inv_y):
    L, H, d = x.shape
    da = d // 2
    tx = coords_xy[:, 0][:, None] * inv_x[None, :]
    xp = _rope_pairwise_ref(x[..., :da].reshape(L, H, -1, 2),
                            jnp.cos(tx)[:, None, :], jnp.sin(tx)[:, None, :]).reshape(L, H, da)
    ty = coords_xy[:, 1][:, None] * inv_y[None, :]
    yp = _rope_pairwise_ref(x[..., da:].reshape(L, H, -1, 2),
                            jnp.cos(ty)[:, None, :], jnp.sin(ty)[:, None, :]).reshape(L, H, da)
    return jnp.concatenate([xp, yp], axis=-1)


def tga_forward_ref(static_grid, history_seq, p):
    hp = jax.lax.Precision.HIGHEST
    init_tok = jnp.broadcast_to(p["init_embed"][None, :], (S, D))
    tokens = jnp.concatenate(
        [init_tok, history_seq.reshape(S * T, D), static_grid.reshape(S, D)], axis=0)
    L = tokens.shape[0]
    q = jnp.dot(tokens, p["wq"], precision=hp).reshape(L, HQ, DH)
    k = jnp.dot(tokens, p["wk"], precision=hp).reshape(L, HKV, DH)
    v = jnp.dot(tokens, p["wv"], precision=hp).reshape(L, HKV, DH)
    coords_all = jnp.concatenate(
        [p["coords"], jnp.tile(p["coords"], (T, 1)), p["coords"]], axis=0)
    q = _apply_rope_2d_ref(q, coords_all, p["inv_x"], p["inv_y"])
    k = _apply_rope_2d_ref(k, coords_all, p["inv_x"], p["inv_y"])
    pos = jnp.repeat(jnp.arange(1, T + 1, dtype=jnp.float32), S)
    q = q.at[S:S + S * T].set(_apply_rope_1d_ref(q[S:S + S * T], pos, p["inv_t"]))
    k = k.at[S:S + S * T].set(_apply_rope_1d_ref(k[S:S + S * T], pos, p["inv_t"]))
    # SDPA on (1, L, Hq, dh): batch dims (1, L); softmax over the KV-head axis.
    scores = jnp.einsum("lqd,lkd->lqk", q, k, precision=hp) / math.sqrt(DH)
    w = jax.nn.softmax(scores, axis=-1)
    out = jnp.einsum("lqk,lkd->lqd", w, v, precision=hp)
    grid_out = jnp.dot(out[S + S * T:].reshape(S, D), p["wo"], precision=hp)
    return grid_out.reshape(G, G, D)


# ===================================== main ====================================

if __name__ == "__main__":
    key = jax.random.PRNGKey(0)
    kp, kg, kh = jax.random.split(key, 3)
    params = init_params(kp)
    static_grid = jax.random.normal(kg, (G, G, D), jnp.float32)
    history_seq = jax.random.normal(kh, (G, G, T, D), jnp.float32)

    out = jax.block_until_ready(tga_forward(static_grid, history_seq, params))
    ref = jax.block_until_ready(tga_forward_ref(static_grid, history_seq, params))

    assert out.shape == (G, G, D) and out.dtype == jnp.float32
    err = float(np.max(np.abs(np.asarray(out) - np.asarray(ref))))
    if not np.allclose(np.asarray(out), np.asarray(ref), atol=1e-3, rtol=1e-3):
        raise AssertionError(f"Pallas output mismatch vs reference, max abs err = {err}")
    print("KERNEL_OK")
</pallas_src>

<mosaic_0001>
module attributes {stable_mosaic.version = 11 : i64} {
  func.func @_tga_kernel(%arg0: i32, %arg1: memref<16x32xf32, #tpu.memory_space<vmem>>, %arg2: memref<16x48xf32, #tpu.memory_space<vmem>>, %arg3: memref<32x64xf32, #tpu.memory_space<vmem>>, %arg4: memref<32x32xf32, #tpu.memory_space<vmem>>, %arg5: memref<16x32xf32, #tpu.memory_space<vmem>>) attributes {dimension_semantics = [#tpu.dimension_semantics<arbitrary>], iteration_bounds = array<i64: 1>, scalar_prefetch = 0 : i64, scratch_operands = 0 : i64, tpu.core_type = #tpu.core_type<tc>, window_params = [{pipeline_mode = #tpu.pipeline_mode<synchronous>, transform_indices = @transform_0, window_bounds = array<i64: 16, 32>}, {pipeline_mode = #tpu.pipeline_mode<synchronous>, transform_indices = @transform_1, window_bounds = array<i64: 16, 48>}, {pipeline_mode = #tpu.pipeline_mode<synchronous>, transform_indices = @transform_2, window_bounds = array<i64: 32, 64>}, {pipeline_mode = #tpu.pipeline_mode<synchronous>, transform_indices = @transform_3, window_bounds = array<i64: 32, 32>}, {pipeline_mode = #tpu.pipeline_mode<synchronous>, transform_indices = @transform_4, window_bounds = array<i64: 16, 32>}]} {
    %c0 = arith.constant 0 : index
    %c0_0 = arith.constant 0 : index
    %0 = vector.load %arg1[%c0, %c0_0] : memref<16x32xf32, #tpu.memory_space<vmem>>, vector<16x32xf32>
    %c0_1 = arith.constant 0 : index
    %c0_2 = arith.constant 0 : index
    %1 = vector.load %arg3[%c0_1, %c0_2] : memref<32x64xf32, #tpu.memory_space<vmem>>, vector<32x64xf32>
    %cst = arith.constant dense<0.000000e+00> : vector<16x64xf32>
    %2 = tpu.matmul %0, %1, %cst {dimension_numbers = #tpu.dot_dimension_numbers<[1], [0], [0], [1], [0, 0, 1, 1], [], []>} : vector<16x32xf32>, vector<32x64xf32>, vector<16x64xf32> -> vector<16x64xf32>
    %3 = vector.extract_strided_slice %2 {offsets = [0, 0], sizes = [16, 32], strides = [1, 1]} : vector<16x64xf32> to vector<16x32xf32>
    %4 = vector.extract_strided_slice %2 {offsets = [0, 32], sizes = [16, 16], strides = [1, 1]} : vector<16x64xf32> to vector<16x16xf32>
    %5 = vector.extract_strided_slice %2 {offsets = [0, 48], sizes = [16, 16], strides = [1, 1]} : vector<16x64xf32> to vector<16x16xf32>
    %c0_3 = arith.constant 0 : index
    %c0_4 = arith.constant 0 : index
    %6 = vector.load %arg2[%c0_3, %c0_4] : memref<16x48xf32, #tpu.memory_space<vmem>>, vector<16x48xf32>
    %7 = vector.extract_strided_slice %6 {offsets = [0, 0], sizes = [16, 16], strides = [1, 1]} : vector<16x48xf32> to vector<16x16xf32>
    %8 = vector.extract_strided_slice %6 {offsets = [0, 16], sizes = [16, 16], strides = [1, 1]} : vector<16x48xf32> to vector<16x16xf32>
    %9 = vector.extract_strided_slice %6 {offsets = [0, 32], sizes = [16, 8], strides = [1, 1]} : vector<16x48xf32> to vector<16x8xf32>
    %10 = vector.extract_strided_slice %6 {offsets = [0, 40], sizes = [16, 8], strides = [1, 1]} : vector<16x48xf32> to vector<16x8xf32>
    %11 = vector.extract_strided_slice %3 {offsets = [0, 0], sizes = [16, 16], strides = [1, 1]} : vector<16x32xf32> to vector<16x16xf32>
    %12 = vector.extract_strided_slice %3 {offsets = [0, 16], sizes = [16, 16], strides = [1, 1]} : vector<16x32xf32> to vector<16x16xf32>
    %13 = vector.extract_strided_slice %4 {offsets = [0, 0], sizes = [16, 8], strides = [1, 1]} : vector<16x16xf32> to vector<16x8xf32>
    %14 = vector.extract_strided_slice %4 {offsets = [0, 8], sizes = [16, 8], strides = [1, 1]} : vector<16x16xf32> to vector<16x8xf32>
    %15 = arith.mulf %11, %7 : vector<16x16xf32>
    %16 = arith.mulf %12, %8 : vector<16x16xf32>
    %17 = arith.subf %15, %16 : vector<16x16xf32>
    %18 = arith.mulf %11, %8 : vector<16x16xf32>
    %19 = arith.mulf %12, %7 : vector<16x16xf32>
    %20 = arith.addf %18, %19 : vector<16x16xf32>
    %21 = arith.mulf %13, %9 : vector<16x8xf32>
    %22 = arith.mulf %14, %10 : vector<16x8xf32>
    %23 = arith.subf %21, %22 : vector<16x8xf32>
    %24 = arith.mulf %13, %10 : vector<16x8xf32>
    %25 = arith.mulf %14, %9 : vector<16x8xf32>
    %26 = arith.addf %24, %25 : vector<16x8xf32>
    %27 = vector.extract_strided_slice %23 {offsets = [0, 0], sizes = [16, 4], strides = [1, 1]} : vector<16x8xf32> to vector<16x4xf32>
    %28 = tpu.concatenate %27, %27, %27, %27 in 1 : vector<16x4xf32>, vector<16x4xf32>, vector<16x4xf32>, vector<16x4xf32> -> vector<16x16xf32>
    %29 = vector.extract_strided_slice %26 {offsets = [0, 0], sizes = [16, 4], strides = [1, 1]} : vector<16x8xf32> to vector<16x4xf32>
    %30 = tpu.concatenate %29, %29, %29, %29 in 1 : vector<16x4xf32>, vector<16x4xf32>, vector<16x4xf32>, vector<16x4xf32> -> vector<16x16xf32>
    %31 = vector.extract_strided_slice %23 {offsets = [0, 4], sizes = [16, 4], strides = [1, 1]} : vector<16x8xf32> to vector<16x4xf32>
    %32 = tpu.concatenate %31, %31, %31, %31 in 1 : vector<16x4xf32>, vector<16x4xf32>, vector<16x4xf32>, vector<16x4xf32> -> vector<16x16xf32>
    %33 = vector.extract_strided_slice %26 {offsets = [0, 4], sizes = [16, 4], strides = [1, 1]} : vector<16x8xf32> to vector<16x4xf32>
    %34 = tpu.concatenate %33, %33, %33, %33 in 1 : vector<16x4xf32>, vector<16x4xf32>, vector<16x4xf32>, vector<16x4xf32> -> vector<16x16xf32>
    %35 = arith.mulf %17, %28 : vector<16x16xf32>
    %36 = arith.mulf %20, %30 : vector<16x16xf32>
    %37 = arith.addf %35, %36 : vector<16x16xf32>
    %38 = arith.mulf %17, %32 : vector<16x16xf32>
    %39 = arith.mulf %20, %34 : vector<16x16xf32>
    %40 = arith.addf %38, %39 : vector<16x16xf32>
    %41 = tpu.concatenate %37, %40 in 1 : vector<16x16xf32>, vector<16x16xf32> -> vector<16x32xf32>
    %42 = tpu.iota {dimensions = array<i32: 0>} : vector<32x8xi32>
    %43 = tpu.iota {dimensions = array<i32: 1>} : vector<32x8xi32>
    %c4_i32 = arith.constant 4 : i32
    %44 = vector.broadcast %c4_i32 : i32 to vector<32x8xi32>
    %45 = arith.muli %43, %44 : vector<32x8xi32>
    %46 = arith.cmpi sge, %42, %45 : vector<32x8xi32>
    %c1_i32 = arith.constant 1 : i32
    %47 = vector.broadcast %c1_i32 : i32 to vector<32x8xi32>
    %48 = arith.addi %43, %47 : vector<32x8xi32>
    %c4_i32_5 = arith.constant 4 : i32
    %49 = vector.broadcast %c4_i32_5 : i32 to vector<32x8xi32>
    %50 = arith.muli %48, %49 : vector<32x8xi32>
    %51 = arith.cmpi slt, %42, %50 : vector<32x8xi32>
    %52 = arith.andi %46, %51 : vector<32x8xi1>
    %53 = arith.extui %52 : vector<32x8xi1> to vector<32x8xi32>
    %54 = arith.sitofp %53 : vector<32x8xi32> to vector<32x8xf32>
    %cst_6 = arith.constant dense<0.000000e+00> : vector<16x8xf32>
    %55 = tpu.matmul %41, %54, %cst_6 {dimension_numbers = #tpu.dot_dimension_numbers<[1], [0], [0], [1], [0, 0, 1, 1], [], []>} : vector<16x32xf32>, vector<32x8xf32>, vector<16x8xf32> -> vector<16x8xf32>
    %56 = vector.extract_strided_slice %55 {offsets = [0, 0], sizes = [16, 4], strides = [1, 1]} : vector<16x8xf32> to vector<16x4xf32>
    %57 = vector.extract_strided_slice %55 {offsets = [0, 4], sizes = [16, 4], strides = [1, 1]} : vector<16x8xf32> to vector<16x4xf32>
    %58 = arith.subf %56, %57 : vector<16x4xf32>
    %cst_7 = arith.constant 0.353553385 : f32
    %59 = vector.broadcast %cst_7 : f32 to vector<16x4xf32>
    %60 = arith.mulf %58, %59 : vector<16x4xf32>
    %61 = math.exp %60 : vector<16x4xf32>
    %cst_8 = arith.constant 1.000000e+00 : f32
    %62 = vector.broadcast %cst_8 : f32 to vector<16x4xf32>
    %63 = arith.addf %62, %61 : vector<16x4xf32>
    %cst_9 = arith.constant 1.000000e+00 : f32
    %64 = vector.broadcast %cst_9 : f32 to vector<16x4xf32>
    %65 = arith.divf %64, %63 : vector<16x4xf32>
    %cst_10 = arith.constant 1.000000e+00 : f32
    %66 = vector.broadcast %cst_10 : f32 to vector<16x4xf32>
    %67 = arith.subf %66, %65 : vector<16x4xf32>
    %68 = tpu.iota {dimensions = array<i32: 0>} : vector<8x64xi32>
    %69 = tpu.iota {dimensions = array<i32: 1>} : vector<8x64xi32>
    %c8_i32 = arith.constant 8 : i32
    %70 = vector.broadcast %c8_i32 : i32 to vector<8x64xi32>
    %71 = arith.muli %68, %70 : vector<8x64xi32>
    %72 = arith.cmpi sge, %69, %71 : vector<8x64xi32>
    %c1_i32_11 = arith.constant 1 : i32
    %73 = vector.broadcast %c1_i32_11 : i32 to vector<8x64xi32>
    %74 = arith.addi %68, %73 : vector<8x64xi32>
    %c8_i32_12 = arith.constant 8 : i32
    %75 = vector.broadcast %c8_i32_12 : i32 to vector<8x64xi32>
    %76 = arith.muli %74, %75 : vector<8x64xi32>
    %77 = arith.cmpi slt, %69, %76 : vector<8x64xi32>
    %78 = arith.andi %72, %77 : vector<8x64xi1>
    %79 = arith.extui %78 : vector<8x64xi1> to vector<8x64xi32>
    %80 = arith.sitofp %79 : vector<8x64xi32> to vector<8x64xf32>
    %81 = tpu.concatenate %67, %65 in 1 : vector<16x4xf32>, vector<16x4xf32> -> vector<16x8xf32>
    %cst_13 = arith.constant dense<0.000000e+00> : vector<16x64xf32>
    %82 = tpu.matmul %81, %80, %cst_13 {dimension_numbers = #tpu.dot_dimension_numbers<[1], [0], [0], [1], [0, 0, 1, 1], [], []>} : vector<16x8xf32>, vector<8x64xf32>, vector<16x64xf32> -> vector<16x64xf32>
    %83 = vector.extract_strided_slice %5 {offsets = [0, 0], sizes = [16, 8], strides = [1, 1]} : vector<16x16xf32> to vector<16x8xf32>
    %84 = tpu.concatenate %83, %83, %83, %83 in 1 : vector<16x8xf32>, vector<16x8xf32>, vector<16x8xf32>, vector<16x8xf32> -> vector<16x32xf32>
    %85 = vector.extract_strided_slice %5 {offsets = [0, 8], sizes = [16, 8], strides = [1, 1]} : vector<16x16xf32> to vector<16x8xf32>
    %86 = tpu.concatenate %85, %85, %85, %85 in 1 : vector<16x8xf32>, vector<16x8xf32>, vector<16x8xf32>, vector<16x8xf32> -> vector<16x32xf32>
    %87 = vector.extract_strided_slice %82 {offsets = [0, 0], sizes = [16, 32], strides = [1, 1]} : vector<16x64xf32> to vector<16x32xf32>
    %88 = arith.mulf %84, %87 : vector<16x32xf32>
    %89 = vector.extract_strided_slice %82 {offsets = [0, 32], sizes = [16, 32], strides = [1, 1]} : vector<16x64xf32> to vector<16x32xf32>
    %90 = arith.mulf %86, %89 : vector<16x32xf32>
    %91 = arith.addf %88, %90 : vector<16x32xf32>
    %c0_14 = arith.constant 0 : index
    %c0_15 = arith.constant 0 : index
    %92 = vector.load %arg4[%c0_14, %c0_15] : memref<32x32xf32, #tpu.memory_space<vmem>>, vector<32x32xf32>
    %cst_16 = arith.constant dense<0.000000e+00> : vector<16x32xf32>
    %93 = tpu.matmul %91, %92, %cst_16 {dimension_numbers = #tpu.dot_dimension_numbers<[1], [0], [0], [1], [0, 0, 1, 1], [], []>} : vector<16x32xf32>, vector<32x32xf32>, vector<16x32xf32> -> vector<16x32xf32>
    %c0_17 = arith.constant 0 : index
    %c0_18 = arith.constant 0 : index
    %94 = vector.load %arg5[%c0_17, %c0_18] : memref<16x32xf32, #tpu.memory_space<vmem>>, vector<16x32xf32>
    tpu.vector_store %arg5[%c0_17, %c0_18], %93 {strides = array<i32>} : memref<16x32xf32, #tpu.memory_space<vmem>>, vector<16x32xf32>,
    return
  }
  func.func @transform_0(%arg0: i32) -> (i32, i32) {
    %c0_i32 = arith.constant 0 : i32
    %c0_i32_0 = arith.constant 0 : i32
    %c0_i32_1 = arith.constant 0 : i32
    return %c0_i32, %c0_i32_0 : i32, i32
  }
  func.func @transform_1(%arg0: i32) -> (i32, i32) {
    %c0_i32 = arith.constant 0 : i32
    %c0_i32_0 = arith.constant 0 : i32
    %c0_i32_1 = arith.constant 0 : i32
    return %c0_i32, %c0_i32_0 : i32, i32
  }
  func.func @transform_2(%arg0: i32) -> (i32, i32) {
    %c0_i32 = arith.constant 0 : i32
    %c0_i32_0 = arith.constant 0 : i32
    %c0_i32_1 = arith.constant 0 : i32
    return %c0_i32, %c0_i32_0 : i32, i32
  }
  func.func @transform_3(%arg0: i32) -> (i32, i32) {
    %c0_i32 = arith.constant 0 : i32
    %c0_i32_0 = arith.constant 0 : i32
    %c0_i32_1 = arith.constant 0 : i32
    return %c0_i32, %c0_i32_0 : i32, i32
  }
  func.func @transform_4(%arg0: i32) -> (i32, i32) {
    %c0_i32 = arith.constant 0 : i32
    %c0_i32_0 = arith.constant 0 : i32
    %c0_i32_1 = arith.constant 0 : i32
    return %c0_i32, %c0_i32_0 : i32, i32
  }
}

</mosaic_0001>

<bundles_post_ra>
// kernel: tpu_custom_call.1
= control target key start
LH: loop header
LB: loop body
LE: loop exit
PB: predicated region body
PF: predicated region fallthrough
CT: control target
= control target key end

     0   :  { %9 = vsyncpa [#allocation3], 0  ;;  %s1167_s0 = inlined_call_operand.hbm [shape: f32[16,32], index: 0, kind: input, shape index: {}]   ;;  %s1168_s1 = inlined_call_operand.hbm [shape: f32[16,48], index: 1, kind: input, shape index: {}]   ;;  %s1169_s2 = inlined_call_operand.hbm [shape: f32[32,64], index: 2, kind: input, shape index: {}]   ;;  %s1170_s3 = inlined_call_operand.hbm [shape: f32[32,32], index: 3, kind: input, shape index: {}]   ;;  %s1171_s4 = inlined_call_operand.hbm [shape: f32[16,32], index: 4, kind: output, shape index: {}]  }
   0x1   :  { %10 = vsyncpa [#allocation6], 0 }
   0x2   :  { %11 = vsyncpa [#allocation9], 0 }
   0x3   :  { %12 = vsyncpa [#allocation4], 0  ;;  %s964_s15 = smov [#allocation5]   ;;  %s965_s17 = smov [#allocation2]  }
   0x4   :  { %s30_s16 = sshll.u32 %s964_s15, 4  ;;  %s18_s18 = sshll.u32 %s965_s17, 4  ;;  %s31_s16 = int_to_ptr.vmem [resolvable:$true] %s30_s16  ;;  %s19_s18 = int_to_ptr.vmem [resolvable:$true] %s18_s18 }
   0x5   :  { %s864_s19 = scalar_lea.vmem %s31_s16, 256  ;;  %p869_p1 = scmp.lt.s32.totalorder %s31_s16, %s31_s16 }
   0x6   :  { %p865_p0 = scmp.ne.s32.totalorder %s31_s16, %s864_s19  ;;  %p870_p2 = scmp.lt.s32.totalorder %s864_s19, %s864_s19 }
   0x8   :  { %p871_p3 = por %p870_p2, %p869_p1 }
   0xa   :  { %p872_p4 = pnand %p871_p3, %p865_p0 }
   0xc   :  { %875 = shalt.err (!%p872_p4)
}
   0xd   :  { %s966_s20 = smov 128   ;;  %s967_s21 = smov 8  }
   0xe   :  { %36 = dma.hbm_to_vmem [thread:$0]  %s1168_s1, 256, %s31_s16, [#allocation6], %s966_s20, %s966_s20, %s967_s21  }
   0xf   :  { %s884_s24 = scalar_lea.vmem %s19_s18, 256  ;;  %p889_p6 = scmp.lt.s32.totalorder %s19_s18, %s19_s18 }
  0x10   :  { %p885_p5 = scmp.ne.s32.totalorder %s19_s18, %s884_s24  ;;  %p890_p7 = scmp.lt.s32.totalorder %s884_s24, %s884_s24 }
  0x12   :  { %p891_p8 = por %p890_p7, %p889_p6 }
  0x14   :  { %p892_p9 = pnand %p891_p8, %p885_p5 }
  0x16   :  { %895 = shalt.err (!%p892_p9)
}
  0x17   :  { %24 = dma.hbm_to_vmem [thread:$0]  %s1167_s0, 256, %s19_s18, [#allocation3], %s966_s20, %s966_s20, %s967_s21  }
  0x18   :  { %s968_s27 = smov [#allocation7]   ;;  %s969_s29 = smov [#allocation8]  }
  0x19   :  { %s42_s28 = sshll.u32 %s968_s27, 4  ;;  %s54_s30 = sshll.u32 %s969_s29, 4  ;;  %s43_s28 = int_to_ptr.vmem [resolvable:$true] %s42_s28  ;;  %s55_s30 = int_to_ptr.vmem [resolvable:$true] %s54_s30 }
  0x1a   :  { %s904_s1 = scalar_lea.vmem %s43_s28, 512  ;;  %p909_p11 = scmp.lt.s32.totalorder %s43_s28, %s43_s28 }
  0x1b   :  { %p905_p10 = scmp.ne.s32.totalorder %s43_s28, %s904_s1  ;;  %p910_p12 = scmp.lt.s32.totalorder %s904_s1, %s904_s1 }
  0x1d   :  { %p911_p13 = por %p910_p12, %p909_p11 }
  0x1f   :  { %p912_p0 = pnand %p911_p13, %p905_p10 }
  0x21   :  { %915 = shalt.err (!%p912_p0)
}
  0x22   :  { %48 = dma.hbm_to_vmem [thread:$0]  %s1169_s2, 512, %s43_s28, [#allocation6], %s966_s20, %s966_s20, %s967_s21  }
  0x23   :  { %s924_s0 = scalar_lea.vmem %s55_s30, 512  ;;  %p929_p2 = scmp.lt.s32.totalorder %s55_s30, %s55_s30 }
  0x24   :  { %p925_p1 = scmp.ne.s32.totalorder %s55_s30, %s924_s0  ;;  %p930_p3 = scmp.lt.s32.totalorder %s924_s0, %s924_s0 }
  0x26   :  { %p931_p4 = por %p930_p3, %p929_p2 }
  0x28   :  { %p932_p5 = pnand %p931_p4, %p925_p1 }
  0x2a   :  { %935 = shalt.err (!%p932_p5)
}
  0x2b   :  { %60 = dma.hbm_to_vmem [thread:$0]  %s1170_s3, 512, %s55_s30, [#allocation9], %s966_s20, %s966_s20, %s967_s21  }
  0x2c   :  { %956 = dma.done.wait [#allocation3], 256  }
  0x2d   :  { %957 = vsyncadd [#allocation3], 4294967040 }
  0x2e   :  { %958 = dma.done.wait [#allocation6], 768  }
  0x2f   :  { %959 = vsyncadd [#allocation6], 4294966528 }
  0x30   :  { %960 = dma.done.wait [#allocation9], 512  }
  0x31   :  { %961 = vsyncadd [#allocation9], 4294966784  ;;  %vm79_vm0 = vcmask 261120   ;;  %v78_v0 = vld [vmem:[#allocation7 + $0x18] sm:$0xff]  ;;  %v77_v1 = vld [vmem:[#allocation7 + $0x10] sm:$0xff]  ;;  %s970_s2 = smov 120   ;;  %v351_v32 = vlaneseq }
  0x32   :  { %789 = vmatprep.subr.mxu0 %v78_v0  ;;  %v73_v2 = vld [vmem:[#allocation2] sm:$0xff]  ;;  %v76_v3 = vld [vmem:[#allocation7 + $0x8] sm:$0xff]  ;;  %v161_v4 = vld [vmem:[#allocation5] sm:$0xff]  ;;  %s971_s3 = smov 16   ;;  %s972_s9 = smov 112   ;;  %v978_v40 = vmov 1.0  }
  0x33   :  { %790 = vmatpush3.msra.mxu0 %v78_v0  ;;  %797 = vmatprep.mubr.msk.f32.mxu0 %vm79_vm0, %v73_v2  ;;  %v75_v5 = vld [vmem:[#allocation7] sm:$0xff]  ;;  %v162_v6 = vld [vmem:[#allocation5 + $0x8] sm:$0xff]  ;;  %v74_v7 = vld [vmem:[#allocation2 + $0x8] sm:$0xff]  ;;  %s973_s10 = smov 96   ;;  %s974_s11 = smov 92   ;;  %v1070_v33 = vshrl.u32 %v351_v32, 7 }
  0x34   :  { %791 = vmatprep.subr.mxu0 %v77_v1  ;;  %219 = vrot.lane.b32.xlu0 %v161_v4, %s967_s21  ;;  %s975_s12 = smov 100   ;;  %s976_s13 = smov 104   ;;  %v1072_v34 = vand.u32 127, %v351_v32  ;;  %vm263_vm7 = vcmask 31744   ;;  %vm266_vm8 = vcmask 64512   ;;  %vm269_vm15 = vcmask 97280  }
  0x35   :  { %792 = vmatpush3.msra.mxu0 %v77_v1  ;;  %211 = vrot.lane.b32.xlu1 %v161_v4, %s970_s2  ;;  %s977_s14 = smov 108   ;;  %v355_v35 = vadd.s32 24, %v1070_v33  ;;  %v354_v38 = vadd.s32 16, %v1070_v33  ;;  %v353_v62 = vadd.s32 8, %v1070_v33  ;;  %s979_s15 = smov 124  }
  0x36   :  { %793 = vmatprep.subr.mxu0 %v76_v3  ;;  %v358_v36 = vmul.u32 4, %v1072_v34  ;;  %v363_v37 = vadd.s32 1, %v1072_v34  ;;  %s980_s16 = smov 4   ;;  %s981_s17 = smov 88  }
  0x37   :  { %794 = vmatpush3.msra.mxu0 %v76_v3  ;;  %s982_s18 = smov 80   ;;  %s983_s19 = smov 72  }
  0x38   :  { %795 = vmatprep.subr.mxu0 %v75_v5  ;;  %221 = vrot.lane.b32.xlu0 %v162_v6, %s967_s21  ;;  %vm362_vm1 = vcmp.ge.s32.totalorder %v355_v35, %v358_v36  ;;  %v364_v39 = vmul.u32 4, %v363_v37  ;;  %vm361_vm2 = vcmp.ge.s32.totalorder %v354_v38, %v358_v36  ;;  %vm360_vm9 = vcmp.ge.s32.totalorder %v353_v62, %v358_v36  ;;  %s984_s22 = smov [#allocation10]  }
  0x39   :  { %796 = vmatpush3.msra.mxu0 %v75_v5  ;;  %213 = vrot.lane.b32.xlu1 %v162_v6, %s970_s2  ;;  %vm359_vm12 = vcmp.ge.s32.totalorder %v1070_v33, %v358_v36  ;;  %s736_s23 = sshll.u32 %s984_s22, 4  ;;  %s737_s23 = int_to_ptr.vmem [resolvable:$true] %s736_s23 }
  0x3a   :  { %798 = vmatmul.mubr.msk.f32.vlgmr.msra.gmra.mxu0 %vm79_vm0, %v74_v7  ;;  %vm368_vm3 = vcmp.lt.s32.totalorder %v355_v35, %v364_v39  ;;  %vm367_vm4 = vcmp.lt.s32.totalorder %v354_v38, %v364_v39  ;;  %vm366_vm10 = vcmp.lt.s32.totalorder %v353_v62, %v364_v39  ;;  %vm365_vm13 = vcmp.lt.s32.totalorder %v1070_v33, %v364_v39  ;;  %s936_s24 = scalar_lea.vmem %s737_s23, 256  ;;  %p941_p7 = scmp.lt.s32.totalorder %s737_s23, %s737_s23 }
  0x3b   :  { %vm372_vm5 = vmand %vm362_vm1, %vm368_vm3  ;;  %vm348_vm1 = vcmask 130048   ;;  %p937_p6 = scmp.ne.s32.totalorder %s737_s23, %s936_s24  ;;  %p942_p8 = scmp.lt.s32.totalorder %s936_s24, %s936_s24 }
  0x3c   :  { %185 = vrot.lane.b32.xlu0 %v161_v4, %s971_s3  ;;  %800 = vmatprep.subr.msk.mxu1 %vm372_vm5, %v978_v40  ;;  %vm371_vm6 = vmand %vm361_vm2, %vm367_vm4 }
  0x3d   :  { %801 = vmatpush3.msk.msra.mxu1 %vm372_vm5, %v978_v40  ;;  %vm370_vm11 = vmand %vm360_vm9, %vm366_vm10  ;;  %vm615_vm5 = vcmask 195584   ;;  %p943_p9 = por %p942_p8, %p941_p7 }
  0x3e   :  { %802 = vmatprep.subr.msk.mxu1 %vm371_vm6, %v978_v40  ;;  %vm369_vm14 = vmand %vm359_vm12, %vm365_vm13 }
  0x3f   :  { %803 = vmatpush3.msk.msra.mxu1 %vm371_vm6, %v978_v40  ;;  %p944_p10 = pnand %p943_p9, %p937_p6 }
  0x40   :  { %804 = vmatprep.subr.msk.mxu1 %vm370_vm11, %v978_v40 }
  0x41   :  { %805 = vmatpush3.msk.msra.mxu1 %vm370_vm11, %v978_v40 }
  0x42   :  { %806 = vmatprep.subr.msk.mxu1 %vm369_vm14, %v978_v40 }
  0x43   :  { %807 = vmatpush3.msk.msra.mxu1 %vm369_vm14, %v978_v40 }
  0xa6   :  { %v220_v8 = vpop.permute.xlu0 %219 }
  0xa7   :  { %v212_v16 = vpop.permute.xlu1 %211 }
  0xaa   :  { %v222_v14 = vpop.permute.xlu0 %221 }
  0xab   :  { %v214_v17 = vpop.permute.xlu1 %213 }
  0xae   :  { %v186_v18 = vpop.permute.xlu0 %185 }
  0xfa   :  { %v1039_v9 = vpop.f32.mrf.mxu0 }
  0xfb   :  { %v1042_v10 = vmul.f32 %v1039_v9, %v162_v6  ;;  %v226_v15 = vmul.f32 %v1039_v9, %v222_v14  ;;  %v218_v23 = vmul.f32 %v1039_v9, %v214_v17 }
  0xfc   :  { %v1044_v11 = vpop.f32.mrf.mxu0 }
  0xfd   :  { %205 = vrot.lane.b32.xlu1 %v1042_v10, %s970_s2  ;;  %v1048_v12 = vmul.f32 %v161_v4, %v1044_v11  ;;  %v225_v13 = vmul.f32 %v220_v8, %v1044_v11  ;;  %v191_v28 = vmul.f32 %v186_v18, %v1044_v11  ;;  %v217_v29 = vmul.f32 %v212_v16, %v1044_v11 }
  0xff   :  { %203 = vrot.lane.b32.xlu0 %v1048_v12, %s970_s2 }
 0x101   :  { %229 = vrot.lane.b32.xlu1 %v225_v13, %s970_s2 }
 0x103   :  { %231 = vrot.lane.b32.xlu0 %v226_v15, %s970_s2 }
 0x105   :  { %187 = vrot.lane.b32.xlu1 %v162_v6, %s971_s3 }
 0x107   :  { %177 = vrot.lane.b32.xlu0 %v161_v4, %s972_s9 }
 0x109   :  { %179 = vrot.lane.b32.xlu1 %v162_v6, %s972_s9 }
 0x10b   :  { %169 = vrot.lane.b32.xlu0 %v1042_v10, %s972_s9 }
 0x10f   :  { %167 = vrot.lane.b32.xlu0 %v1048_v12, %s972_s9 }
 0x16f   :  { %v206_v19 = vpop.permute.xlu1 %205 }
 0x170   :  { %v210_v20 = vsub.f32 %v1042_v10, %v206_v19 }
 0x171   :  { %v204_v21 = vpop.permute.xlu0 %203 }
 0x172   :  { %241 = vrot.lane.b32.xlu0 %v210_v20, %s973_s10  ;;  %v209_v31 = vsub.f32 %v1048_v12, %v204_v21 }
 0x173   :  { %v230_v22 = vpop.permute.xlu1 %229 }
 0x174   :  { %v235_v30 = vadd.f32 %v230_v22, %v217_v29 }
 0x175   :  { %v232_v24 = vpop.permute.xlu0 %231 }
 0x176   :  { %v236_v25 = vadd.f32 %v232_v24, %v218_v23 }
 0x177   :  { %v188_v26 = vpop.permute.xlu1 %187 }
 0x178   :  { %v192_v27 = vmul.f32 %v1039_v9, %v188_v26  ;;  %276 = vrot.lane.b32.xlu0 %v236_v25, %s973_s10 }
 0x179   :  { %v178_v41 = vpop.permute.xlu0 %177 }
 0x17a   :  { %197 = vrot.lane.b32.xlu1 %v192_v27, %s972_s9  ;;  %v183_v7 = vmul.f32 %v178_v41, %v1044_v11 }
 0x17b   :  { %v180_v45 = vpop.permute.xlu1 %179 }
 0x17c   :  { %306 = vrot.lane.b32.xlu0 %v210_v20, %s974_s11  ;;  %v184_v26 = vmul.f32 %v1039_v9, %v180_v45 }
 0x17d   :  { %v170_v42 = vpop.permute.xlu0 %169 }
 0x17e   :  { %195 = vrot.lane.b32.xlu1 %v191_v28, %s972_s9  ;;  %v174_v8 = vsub.f32 %v1042_v10, %v170_v42 }
 0x180   :  { %247 = vrot.lane.b32.xlu0 %v210_v20, %s975_s12 }
 0x181   :  { %v168_v43 = vpop.permute.xlu0 %167 }
 0x182   :  { %318 = vrot.lane.b32.xlu1 %v236_v25, %s974_s11  ;;  %v173_v5 = vsub.f32 %v1048_v12, %v168_v43 }
 0x184   :  { %282 = vrot.lane.b32.xlu0 %v236_v25, %s975_s12 }
 0x186   :  { %274 = vrot.lane.b32.xlu1 %v235_v30, %s973_s10 }
 0x188   :  { %239 = vrot.lane.b32.xlu0 %v209_v31, %s973_s10 }
 0x18a   :  { %316 = vrot.lane.b32.xlu1 %v235_v30, %s974_s11 }
 0x18c   :  { %304 = vrot.lane.b32.xlu0 %v209_v31, %s974_s11 }
 0x18e   :  { %245 = vrot.lane.b32.xlu1 %v209_v31, %s975_s12 }
 0x190   :  { %253 = vrot.lane.b32.xlu0 %v210_v20, %s976_s13 }
 0x192   :  { %280 = vrot.lane.b32.xlu1 %v235_v30, %s975_s12 }
 0x194   :  { %257 = vrot.lane.b32.xlu0 %v209_v31, %s977_s14 }
 0x196   :  { %251 = vrot.lane.b32.xlu1 %v209_v31, %s976_s13 }
 0x198   :  { %259 = vrot.lane.b32.xlu0 %v210_v20, %s977_s14 }
 0x19a   :  { %286 = vrot.lane.b32.xlu1 %v235_v30, %s976_s13 }
 0x19e   :  { %288 = vrot.lane.b32.xlu1 %v236_v25, %s976_s13 }
 0x1a2   :  { %292 = vrot.lane.b32.xlu1 %v235_v30, %s977_s14 }
 0x1a6   :  { %294 = vrot.lane.b32.xlu1 %v236_v25, %s977_s14 }
 0x1e4   :  { %v242_v44 = vpop.permute.xlu0 %241 }
 0x1ea   :  { %v277_v46 = vpop.permute.xlu0 %276 }
 0x1ec   :  { %v198_v47 = vpop.permute.xlu1 %197 }
 0x1ed   :  { %v202_v31 = vadd.f32 %v198_v47, %v184_v26 }
 0x1ee   :  { %v307_v48 = vpop.permute.xlu0 %306 }
 0x1ef   :  { %v311_v23 = vsel %vm263_vm7, %v307_v48, %v242_v44 }
 0x1f0   :  { %v196_v49 = vpop.permute.xlu1 %195 }
 0x1f1   :  { %v201_v19 = vadd.f32 %v196_v49, %v183_v7 }
 0x1f2   :  { %v248_v50 = vpop.permute.xlu0 %247 }
 0x1f3   :  { %v265_v51 = vsel %vm263_vm7, %v242_v44, %v248_v50  ;;  %v313_v27 = vsel %vm266_vm8, %v311_v23, %v248_v50 }
 0x1f4   :  { %v319_v52 = vpop.permute.xlu1 %318 }
 0x1f5   :  { %v323_v10 = vsel %vm263_vm7, %v319_v52, %v277_v46 }
 0x1f6   :  { %v283_v53 = vpop.permute.xlu0 %282 }
 0x1f7   :  { %v299_v54 = vsel %vm263_vm7, %v277_v46, %v283_v53  ;;  %v325_v32 = vsel %vm266_vm8, %v323_v10, %v283_v53 }
 0x1f8   :  { %v275_v55 = vpop.permute.xlu1 %274 }
 0x1fa   :  { %v240_v56 = vpop.permute.xlu0 %239 }
 0x1fc   :  { %v317_v57 = vpop.permute.xlu1 %316 }
 0x1fd   :  { %v322_v16 = vsel %vm263_vm7, %v317_v57, %v275_v55  ;;  %v486_v57 = vmul.u32 8, %v1070_v33 }
 0x1fe   :  { %v305_v58 = vpop.permute.xlu0 %304 }
 0x1ff   :  { %v310_v3 = vsel %vm263_vm7, %v305_v58, %v240_v56  ;;  %v488_v58 = vadd.s32 1, %v1070_v33  ;;  %vm487_vm2 = vcmp.ge.s32.totalorder %v1072_v34, %v486_v57 }
 0x200   :  { %v246_v59 = vpop.permute.xlu1 %245 }
 0x201   :  { %v264_v60 = vsel %vm263_vm7, %v240_v56, %v246_v59  ;;  %v312_v13 = vsel %vm266_vm8, %v310_v3, %v246_v59  ;;  %v489_v59 = vmul.u32 8, %v488_v58 }
 0x202   :  { %v254_v61 = vpop.permute.xlu0 %253 }
 0x203   :  { %v268_v63 = vsel %vm266_vm8, %v265_v51, %v254_v61  ;;  %v315_v30 = vsel %vm269_vm15, %v313_v27, %v254_v61  ;;  %vm490_vm3 = vcmp.lt.s32.totalorder %v1072_v34, %v489_v59 }
 0x204   :  { %v281_v0 = vpop.permute.xlu1 %280  ;;  %v335_v39 = vmul.f32 %v315_v30, %v174_v8  ;;  %vm491_vm4 = vmand %vm487_vm2, %vm490_vm3 }
 0x205   :  { %v298_v1 = vsel %vm263_vm7, %v275_v55, %v281_v0  ;;  %v324_v20 = vsel %vm266_vm8, %v322_v16, %v281_v0  ;;  %811 = vmatprep.subr.msk.mxu0 %vm491_vm4, %v978_v40 }
 0x206   :  { %v258_v2 = vpop.permute.xlu0 %257  ;;  %812 = vmatpush3.msk.msra.mxu0 %vm491_vm4, %v978_v40 }
 0x208   :  { %v252_v4 = vpop.permute.xlu1 %251 }
 0x209   :  { %v267_v6 = vsel %vm266_vm8, %v264_v60, %v252_v4  ;;  %v314_v17 = vsel %vm269_vm15, %v312_v13, %v252_v4 }
 0x20a   :  { %v270_v14 = vsel %vm269_vm15, %v267_v6, %v258_v2  ;;  %v260_v15 = vpop.permute.xlu0 %259  ;;  %v334_v28 = vmul.f32 %v314_v17, %v173_v5  ;;  %v647_v17 = vld [vmem:[#allocation8 + $0x18] sm:$0xff] }
 0x20b   :  { %v328_v18 = vmul.f32 %v270_v14, %v173_v5  ;;  %v271_v12 = vsel %vm269_vm15, %v268_v63, %v260_v15  ;;  %816 = vmatprep.subr.mxu1 %v647_v17 }
 0x20c   :  { %v329_v21 = vmul.f32 %v271_v12, %v174_v8  ;;  %v287_v22 = vpop.permute.xlu1 %286 }
 0x20d   :  { %v300_v24 = vsel %vm266_vm8, %v298_v1, %v287_v22  ;;  %v326_v25 = vsel %vm269_vm15, %v324_v20, %v287_v22 }
 0x20e   :  { %v336_v29 = vmul.f32 %v326_v25, %v201_v19 }
 0x210   :  { %v289_v35 = vpop.permute.xlu1 %288  ;;  %v338_v36 = vadd.f32 %v336_v29, %v334_v28 }
 0x211   :  { %v301_v37 = vsel %vm266_vm8, %v299_v54, %v289_v35  ;;  %v327_v38 = vsel %vm269_vm15, %v325_v32, %v289_v35 }
 0x212   :  { %v337_v41 = vmul.f32 %v327_v38, %v202_v31  ;;  %342 = vrot.lane.b32.xlu0 %v338_v36, %s971_s3 }
 0x214   :  { %v293_v42 = vpop.permute.xlu1 %292  ;;  %v339_v43 = vadd.f32 %v337_v41, %v335_v39 }
 0x215   :  { %v302_v44 = vsel %vm269_vm15, %v300_v24, %v293_v42 }
 0x216   :  { %v330_v45 = vmul.f32 %v302_v44, %v201_v19  ;;  %344 = vrot.lane.b32.xlu1 %v339_v43, %s971_s3 }
 0x218   :  { %v332_v46 = vadd.f32 %v330_v45, %v328_v18  ;;  %v295_v47 = vpop.permute.xlu1 %294  ;;  %v646_v18 = vld [vmem:[#allocation8 + $0x10] sm:$0xff] }
 0x219   :  { %v303_v48 = vsel %vm269_vm15, %v301_v37, %v295_v47 }
 0x21a   :  { %v331_v49 = vmul.f32 %v303_v48, %v202_v31 }
 0x21c   :  { %v333_v50 = vadd.f32 %v331_v49, %v329_v21 }
 0x284   :  { %v343_v51 = vpop.permute.xlu0 %342 }
 0x285   :  { %v349_v52 = vsel %vm348_vm1, %v332_v46, %v343_v51 }
 0x286   :  { %808 = vmatprep.mubr.msk.f32.mxu1 %vm79_vm0, %v349_v52 }
 0x288   :  { %v345_v53 = vpop.permute.xlu1 %344 }
 0x289   :  { %v350_v54 = vsel %vm348_vm1, %v333_v50, %v345_v53 }
 0x28a   :  { %809 = vmatmul.mubr.msk.f32.vlgmr.msra.gmra.mxu1 %vm79_vm0, %v350_v54 }
 0x28b   :  { %817 = vmatpush3.msra.mxu1 %v647_v17 }
 0x28c   :  { %818 = vmatprep.subr.mxu1 %v646_v18 }
 0x28d   :  { %819 = vmatpush3.msra.mxu1 %v646_v18 }
 0x34a   :  { %v810_v55 = vpop.f32.mrf.mxu1 }
 0x34b   :  { %466 = vrot.lane.b32.xlu1 %v810_v55, %s979_s15 }
 0x34c   :  { %v453_v56 = vpop.f32.mrf.mxu1 }
 0x34d   :  { %464 = vrot.lane.b32.xlu0 %v453_v56, %s979_s15 }
 0x3bd   :  { %v467_v60 = vpop.permute.xlu1 %466 }
 0x3be   :  { %v471_v61 = vsub.f32 %v810_v55, %v467_v60 }
 0x3bf   :  { %v465_v62 = vpop.permute.xlu0 %464 }
 0x3c0   :  { %v473_v63 = vmul.f32 0.35355338, %v471_v61  ;;  %v470_v0 = vsub.f32 %v453_v56, %v465_v62 }
 0x3c2   :  { %v476_v1 = vmul.f32 1.442695, %v473_v63  ;;  %v472_v2 = vmul.f32 0.35355338, %v470_v0 }
 0x3c4   :  { %848 = vpow2.f32 %v476_v1  ;;  %v474_v3 = vmul.f32 1.442695, %v472_v2 }
 0x3c6   :  { %850 = vpow2.f32 %v474_v3 }
 0x3d1   :  { %v849_v33 = vpop.eup %848 }
 0x3d2   :  { %v479_v4 = vadd.f32 1.0, %v849_v33 }
 0x3d3   :  { %v851_v5 = vpop.eup %850 }
 0x3d4   :  { %852 = vrcp.f32 %v479_v4  ;;  %v478_v34 = vadd.f32 1.0, %v851_v5 }
 0x3d6   :  { %854 = vrcp.f32 %v478_v34 }
 0x3e1   :  { %v853_v6 = vpop.eup %852 }
 0x3e2   :  { %498 = vrot.lane.b32.xlu1 %v853_v6, %s980_s16  ;;  %v485_v13 = vsub.f32 1.0, %v853_v6 }
 0x3e3   :  { %v855_v40 = vpop.eup %854 }
 0x3e4   :  { %496 = vrot.lane.b32.xlu0 %v855_v40, %s980_s16  ;;  %v484_v8 = vsub.f32 1.0, %v855_v40 }
 0x3e6   :  { %593 = vrot.lane.b32.xlu1 %v1044_v11, %s981_s17 }
 0x3e8   :  { %587 = vrot.lane.b32.xlu0 %v1044_v11, %s982_s18 }
 0x3ea   :  { %589 = vrot.lane.b32.xlu1 %v1039_v9, %s982_s18 }
 0x3ec   :  { %618 = vrot.lane.b32.xlu0 %v1044_v11, %s983_s19 }
 0x3ee   :  { %599 = vrot.lane.b32.xlu1 %v1044_v11, %s973_s10 }
 0x3f0   :  { %595 = vrot.lane.b32.xlu0 %v1039_v9, %s981_s17 }
 0x3f2   :  { %601 = vrot.lane.b32.xlu1 %v1039_v9, %s973_s10 }
 0x3f4   :  { %620 = vrot.lane.b32.xlu0 %v1039_v9, %s983_s19 }
 0x3f6   :  { %607 = vrot.lane.b32.xlu1 %v1039_v9, %s976_s13  ;;  %v645_v9 = vld [vmem:[#allocation8 + $0x8] sm:$0xff] }
 0x3f7   :  { %820 = vmatprep.subr.mxu1 %v645_v9 }
 0x3f8   :  { %605 = vrot.lane.b32.xlu0 %v1044_v11, %s976_s13  ;;  %821 = vmatpush3.msra.mxu1 %v645_v9  ;;  %v644_v11 = vld [vmem:[#allocation8] sm:$0xff] }
 0x3f9   :  { %822 = vmatprep.subr.mxu1 %v644_v11 }
 0x3fa   :  { %823 = vmatpush3.msra.mxu1 %v644_v11 }
 0x454   :  { %v499_v7 = vpop.permute.xlu1 %498 }
 0x455   :  { %v503_v16 = vsel %vm263_vm7, %v485_v13, %v499_v7 }
 0x456   :  { %v497_v14 = vpop.permute.xlu0 %496 }
 0x457   :  { %v502_v15 = vsel %vm263_vm7, %v484_v8, %v497_v14 }
 0x458   :  { %813 = vmatprep.mubr.msk.f32.mxu0 %vm266_vm8, %v502_v15  ;;  %v594_v20 = vpop.permute.xlu1 %593 }
 0x459   :  { %814 = vmatmul.mubr.msk.f32.vlgmr.msra.gmra.mxu0 %vm266_vm8, %v503_v16 }
 0x45a   :  { %v588_v21 = vpop.permute.xlu0 %587 }
 0x45b   :  { %v611_v36 = vsel %vm266_vm8, %v588_v21, %v594_v20 }
 0x45c   :  { %v590_v22 = vpop.permute.xlu1 %589 }
 0x45e   :  { %v619_v23 = vpop.permute.xlu0 %618 }
 0x45f   :  { %v624_v28 = vsel %vm266_vm8, %v619_v23, %v588_v21 }
 0x460   :  { %v600_v10 = vpop.permute.xlu1 %599  ;;  %v626_v35 = vsel %vm348_vm1, %v624_v28, %v594_v20 }
 0x461   :  { %v613_v38 = vsel %vm348_vm1, %v611_v36, %v600_v10  ;;  %v628_v44 = vsel %vm615_vm5, %v626_v35, %v600_v10 }
 0x462   :  { %v596_v24 = vpop.permute.xlu0 %595 }
 0x463   :  { %v612_v32 = vsel %vm266_vm8, %v590_v22, %v596_v24 }
 0x464   :  { %v602_v25 = vpop.permute.xlu1 %601 }
 0x465   :  { %v614_v41 = vsel %vm348_vm1, %v612_v32, %v602_v25 }
 0x466   :  { %v621_v26 = vpop.permute.xlu0 %620 }
 0x467   :  { %v625_v27 = vsel %vm266_vm8, %v621_v26, %v590_v22 }
 0x468   :  { %v608_v29 = vpop.permute.xlu1 %607  ;;  %v627_v31 = vsel %vm348_vm1, %v625_v27, %v596_v24 }
 0x469   :  { %v629_v39 = vsel %vm615_vm5, %v627_v31, %v602_v25  ;;  %v617_v46 = vsel %vm615_vm5, %v614_v41, %v608_v29 }
 0x46a   :  { %v606_v30 = vpop.permute.xlu0 %605 }
 0x46b   :  { %v616_v42 = vsel %vm615_vm5, %v613_v38, %v606_v30 }
 0x519   :  { %v815_v12 = vpop.f32.mrf.mxu0 }
 0x51a   :  { %636 = vrot.lane.b32.xlu1 %v815_v12, %s973_s10  ;;  %v631_v49 = vmul.f32 %v815_v12, %v617_v46 }
 0x51b   :  { %v576_v19 = vpop.f32.mrf.mxu0 }
 0x51c   :  { %634 = vrot.lane.b32.xlu0 %v576_v19, %s973_s10  ;;  %v630_v47 = vmul.f32 %v616_v42, %v576_v19 }
 0x58c   :  { %v637_v37 = vpop.permute.xlu1 %636 }
 0x58d   :  { %v641_v43 = vmul.f32 %v637_v37, %v629_v39 }
 0x58e   :  { %v635_v45 = vpop.permute.xlu0 %634 }
 0x58f   :  { %v640_v48 = vmul.f32 %v635_v45, %v628_v44  ;;  %v643_v51 = vadd.f32 %v641_v43, %v631_v49 }
 0x591   :  { %v642_v50 = vadd.f32 %v640_v48, %v630_v47 }
 0x593   :  { %824 = vmatprep.mubr.msk.f32.mxu1 %vm79_vm0, %v642_v50 }
 0x594   :  { %825 = vmatmul.mubr.msk.f32.vlgmr.msra.gmra.mxu1 %vm79_vm0, %v643_v51 }
 0x654   :  { %v826_v52 = vpop.f32.mrf.mxu1 }
 0x655   :  { %730 = vst.msk [vmem:[#allocation10 + $0x8] sm:$0xff] %vm79_vm0, %v826_v52 }
 0x656   :  { %v720_v53 = vpop.f32.mrf.mxu1 }
 0x657   :  { %729 = vst.msk [vmem:[#allocation10] sm:$0xff] %vm79_vm0, %v720_v53 }
 0x658   :  { %947 = shalt.err (!%p944_p10)
}
 0x659   :  { %742 = dma.vmem_to_hbm [thread:$0]  %s737_s23, 256, %s1171_s4, [#allocation4], %s966_s20, %s966_s20, %s967_s21  }
 0x65a   :  { %962 = dma.done.wait [#allocation4], 256  }
 0x65b   :  { %963 = vsyncadd [#allocation4], 4294967040 }
 0x65c   :  { %746 = vsyncpa [#allocation3], 1 }
 0x65d   :  { %747 = vsyncpa [#allocation6], 1 }
 0x65e   :  { %748 = vsyncpa [#allocation9], 1 }
 0x65f   :  { %749 = vsyncpa [#allocation4], 1 }

</bundles_post_ra>
